<compile_context>
chip_gen: v5e
topology: v5e:2x2
jax: 0.10.0
libtpu: 0.0.40
codegen_flags: <defaults>
</compile_context>

<pallas_src>
import functools

import jax
import jax.numpy as jnp
import numpy as np
from jax.experimental import pallas as pl
from jax.experimental.pallas import tpu as pltpu


def _rotary_kernel(cos_ref, sin_ref, q_ref, k_ref, qo_ref, ko_ref):
    # cos_ref / sin_ref : (TS, D/2) in table dtype (f32, or bf16 for bf16 io)
    # q_ref / k_ref / qo_ref / ko_ref : (TB, TS, D) in io dtype
    c = cos_ref[...].astype(jnp.float32)          # (TS, D/2)
    s = sin_ref[...].astype(jnp.float32)          # (TS, D/2)
    half = c.shape[-1]

    def apply(x_ref, o_ref):
        x = x_ref[...].astype(jnp.float32)        # single upcast
        x1 = x[..., :half]
        x2 = x[..., half:]
        # rotate_half folded into half-width form:
        #   out[:half] = x1*cos - x2*sin ; out[half:] = x2*cos + x1*sin
        y = jnp.concatenate([x1 * c - x2 * s, x2 * c + x1 * s], axis=-1)
        o_ref[...] = y.astype(o_ref.dtype)        # single downcast, lane-dense store

    apply(q_ref, qo_ref)
    apply(k_ref, ko_ref)


@functools.lru_cache(maxsize=64)
def _cached_half_tables(seq_len: int, dim: int, tbl_dtype_name: str):
    """Host-built, cached (S, D/2) cos/sin tables (mirrors the torch buffer cache)."""
    inv_freq = 1.0 / (10000.0 ** (np.arange(0, dim, 2, dtype=np.float32) / np.float32(dim)))
    t = np.arange(seq_len, dtype=np.float32)
    freqs = t[:, None] * inv_freq[None, :]        # (S, D/2), float32 like the torch module
    dt = jnp.dtype(tbl_dtype_name)
    return jnp.asarray(np.cos(freqs), dtype=dt), jnp.asarray(np.sin(freqs), dtype=dt)


def _pick_tiles(B, S, D, io_dtype, *, seq_tile=None, target=4096, vmem_budget=24 << 20):
    """Pick (TB, TS): whole batch per step when it fits, big sublane-aligned S tiles."""
    io_item = jnp.dtype(io_dtype).itemsize
    tbl_item = 2 if jnp.dtype(io_dtype) == jnp.dtype(jnp.bfloat16) else 4
    sub = 8 * max(1, 4 // io_item)                # sublane packing multiple for the S dim

    def per_seq_row_bytes(tb):
        # double-buffered: 4 io blocks (q, k, q_out, k_out) + 2 half-width table blocks
        return 2 * (4 * tb * D * io_item + 2 * (D // 2) * tbl_item)

    if seq_tile is not None:
        ts = int(seq_tile)
        tb = B
        while tb > 1 and per_seq_row_bytes(tb) * ts > vmem_budget:
            tb = -(-tb // 2)
        return tb, ts

    tb = B
    rows = vmem_budget // per_seq_row_bytes(tb)
    while rows < sub and tb > 1:                  # batch too big for even one sublane tile
        tb = -(-tb // 2)
        rows = vmem_budget // per_seq_row_bytes(tb)

    ts = min(target, int(rows), S)
    if ts >= S:
        # Whole sequence fits in one block.  Prefer >= 2 sequence tiles (leading
        # parallel axis) so v7x's two TensorCores both get work, when S allows a
        # sublane-aligned split; otherwise use the full-extent block (always legal).
        split = ((-(-S // 2)) + sub - 1) // sub * sub
        ts = split if (sub < S and split < S) else S
    else:
        ts = max(sub, (ts // sub) * sub)
    return tb, ts


def rotary_embedding_forward(q: jax.Array, k: jax.Array, *, seq_tile: int | None = None):
    """q, k: [B, S, D] -> (q_rot, k_rot), matching RotaryEmbedding.forward."""
    assert q.shape == k.shape, "this kernel assumes q and k share (B, S, D)"
    B, S, D = q.shape
    assert D % 2 == 0
    half = D // 2

    # bf16 io -> bf16 tables (halves table HBM bytes again); f32 otherwise.
    tbl_dtype = jnp.bfloat16 if jnp.dtype(q.dtype) == jnp.dtype(jnp.bfloat16) else jnp.float32
    cos_h, sin_h = _cached_half_tables(S, D, jnp.dtype(tbl_dtype).name)

    TB, TS = _pick_tiles(B, S, D, q.dtype, seq_tile=seq_tile)
    num_s = pl.cdiv(S, TS)        # masked last tile if S % TS != 0 (no giant fallback block)
    num_b = pl.cdiv(B, TB)

    # Grid: (seq tiles outer, batch tiles inner).  The table block index only
    # depends on the outer axis, so the trig tiles stay resident across the
    # inner batch loop.  No carried state -> both axes are "parallel".
    tbl_spec = pl.BlockSpec((TS, half), lambda s, b: (s, 0))
    io_spec = pl.BlockSpec((TB, TS, D), lambda s, b: (b, s, 0))

    q_rot, k_rot = pl.pallas_call(
        _rotary_kernel,
        out_shape=(
            jax.ShapeDtypeStruct(q.shape, q.dtype),
            jax.ShapeDtypeStruct(k.shape, k.dtype),
        ),
        grid_spec=pl.GridSpec(
            grid=(num_s, num_b),
            in_specs=[tbl_spec, tbl_spec, io_spec, io_spec],
            out_specs=(io_spec, io_spec),
        ),
        compiler_params=pltpu.CompilerParams(
            dimension_semantics=("parallel", "parallel"),
            vmem_limit_bytes=48 << 20,   # within v7x's 64 MiB per-TC VMEM; plenty on v5e/v6e
        ),
    )(cos_h, sin_h, q, k)
    return q_rot, k_rot


def _reference(q, k):
    # Pure-JAX reference mirroring the PyTorch code (full-width tables + rotate_half).
    B, S, D = k.shape
    inv_freq = 1.0 / (10000.0 ** (jnp.arange(0, D, 2, dtype=jnp.float32) / D))
    t = jnp.arange(S, dtype=jnp.float32)
    freqs = jnp.einsum("i,j->ij", t, inv_freq)
    emb = jnp.concatenate([freqs, freqs], axis=-1)
    cos = jnp.cos(emb)[None, :, :]
    sin = jnp.sin(emb)[None, :, :]

    def rotate_half(x):
        x1, x2 = jnp.split(x, 2, axis=-1)
        return jnp.concatenate([-x2, x1], axis=-1)

    def apply(x):
        c = cos[:, : x.shape[-2], :]
        s = sin[:, : x.shape[-2], :]
        return x * c + rotate_half(x) * s

    return apply(q), apply(k)


def _check(q, k, q_rot, k_rot, rtol, atol):
    q_ref, k_ref = _reference(q.astype(jnp.float32), k.astype(jnp.float32))
    np.testing.assert_allclose(np.asarray(q_rot, dtype=np.float32), np.asarray(q_ref),
                               rtol=rtol, atol=atol)
    np.testing.assert_allclose(np.asarray(k_rot, dtype=np.float32), np.asarray(k_ref),
                               rtol=rtol, atol=atol)


if __name__ == "__main__":
    key = jax.random.PRNGKey(0)

    # Test 1: small, narrow D (single full-extent seq tile).
    kq, kk = jax.random.split(key)
    q = jax.random.normal(kq, (2, 8, 32), dtype=jnp.float32)
    k = jax.random.normal(kk, (2, 8, 32), dtype=jnp.float32)
    q_rot, k_rot = rotary_embedding_forward(q, k)
    jax.block_until_ready((q_rot, k_rot))
    _check(q, k, q_rot, k_rot, rtol=1e-5, atol=1e-5)

    # Test 2: lane-aligned D, sequence split into 2 tiles (v7x dual-core split path).
    kq2, kk2 = jax.random.split(jax.random.PRNGKey(1))
    q2 = jax.random.normal(kq2, (2, 16, 128), dtype=jnp.float32)
    k2 = jax.random.normal(kk2, (2, 16, 128), dtype=jnp.float32)
    q2_rot, k2_rot = rotary_embedding_forward(q2, k2)
    jax.block_until_ready((q2_rot, k2_rot))
    _check(q2, k2, q2_rot, k2_rot, rtol=1e-5, atol=1e-5)

    # Test 3: S not divisible by the seq tile -> masked last tile (hardened picker).
    kq3, kk3 = jax.random.split(jax.random.PRNGKey(2))
    q3 = jax.random.normal(kq3, (2, 20, 128), dtype=jnp.float32)
    k3 = jax.random.normal(kk3, (2, 20, 128), dtype=jnp.float32)
    q3_rot, k3_rot = rotary_embedding_forward(q3, k3)
    jax.block_until_ready((q3_rot, k3_rot))
    _check(q3, k3, q3_rot, k3_rot, rtol=1e-5, atol=1e-5)

    # Test 4: bf16 q/k -> bf16 half-width tables (reduced table bandwidth), f32 math.
    kq4, kk4 = jax.random.split(jax.random.PRNGKey(3))
    q4 = jax.random.normal(kq4, (2, 32, 128), dtype=jnp.bfloat16)
    k4 = jax.random.normal(kk4, (2, 32, 128), dtype=jnp.bfloat16)
    q4_rot, k4_rot = rotary_embedding_forward(q4, k4)
    jax.block_until_ready((q4_rot, k4_rot))
    _check(q4, k4, q4_rot, k4_rot, rtol=5e-2, atol=5e-2)

    print("KERNEL_OK")
</pallas_src>

<mosaic_0001>
module attributes {stable_mosaic.version = 11 : i64} {
  func.func @_rotary_kernel(%arg0: i32, %arg1: i32, %arg2: memref<8x16xf32, #tpu.memory_space<vmem>>, %arg3: memref<8x16xf32, #tpu.memory_space<vmem>>, %arg4: memref<2x8x32xf32, #tpu.memory_space<vmem>>, %arg5: memref<2x8x32xf32, #tpu.memory_space<vmem>>, %arg6: memref<2x8x32xf32, #tpu.memory_space<vmem>>, %arg7: memref<2x8x32xf32, #tpu.memory_space<vmem>>) attributes {dimension_semantics = [#tpu.dimension_semantics<parallel>, #tpu.dimension_semantics<parallel>], iteration_bounds = array<i64: 1, 1>, scalar_prefetch = 0 : i64, scratch_operands = 0 : i64, tpu.core_type = #tpu.core_type<tc>, window_params = [{transform_indices = @transform_0, window_bounds = array<i64: 8, 16>}, {transform_indices = @transform_1, window_bounds = array<i64: 8, 16>}, {transform_indices = @transform_2, window_bounds = array<i64: 2, 8, 32>}, {transform_indices = @transform_3, window_bounds = array<i64: 2, 8, 32>}, {transform_indices = @transform_4, window_bounds = array<i64: 2, 8, 32>}, {transform_indices = @transform_5, window_bounds = array<i64: 2, 8, 32>}]} {
    %c0 = arith.constant 0 : index
    %c0_0 = arith.constant 0 : index
    %0 = vector.load %arg2[%c0, %c0_0] : memref<8x16xf32, #tpu.memory_space<vmem>>, vector<8x16xf32>
    %c0_1 = arith.constant 0 : index
    %c0_2 = arith.constant 0 : index
    %1 = vector.load %arg3[%c0_1, %c0_2] : memref<8x16xf32, #tpu.memory_space<vmem>>, vector<8x16xf32>
    %c0_3 = arith.constant 0 : index
    %c0_4 = arith.constant 0 : index
    %c0_5 = arith.constant 0 : index
    %2 = vector.load %arg4[%c0_3, %c0_4, %c0_5] : memref<2x8x32xf32, #tpu.memory_space<vmem>>, vector<2x8x32xf32>
    %3 = vector.extract_strided_slice %2 {offsets = [0, 0, 0], sizes = [2, 8, 16], strides = [1, 1, 1]} : vector<2x8x32xf32> to vector<2x8x16xf32>
    %4 = vector.extract_strided_slice %2 {offsets = [0, 0, 16], sizes = [2, 8, 16], strides = [1, 1, 1]} : vector<2x8x32xf32> to vector<2x8x16xf32>
    %5 = vector.shape_cast %0 : vector<8x16xf32> to vector<1x8x16xf32>
    %6 = vector.broadcast %5 : vector<1x8x16xf32> to vector<2x8x16xf32>
    %7 = arith.mulf %3, %6 : vector<2x8x16xf32>
    %8 = vector.shape_cast %1 : vector<8x16xf32> to vector<1x8x16xf32>
    %9 = vector.broadcast %8 : vector<1x8x16xf32> to vector<2x8x16xf32>
    %10 = arith.mulf %4, %9 : vector<2x8x16xf32>
    %11 = arith.subf %7, %10 : vector<2x8x16xf32>
    %12 = vector.shape_cast %0 : vector<8x16xf32> to vector<1x8x16xf32>
    %13 = vector.broadcast %12 : vector<1x8x16xf32> to vector<2x8x16xf32>
    %14 = arith.mulf %4, %13 : vector<2x8x16xf32>
    %15 = vector.shape_cast %1 : vector<8x16xf32> to vector<1x8x16xf32>
    %16 = vector.broadcast %15 : vector<1x8x16xf32> to vector<2x8x16xf32>
    %17 = arith.mulf %3, %16 : vector<2x8x16xf32>
    %18 = arith.addf %14, %17 : vector<2x8x16xf32>
    %19 = tpu.concatenate %11, %18 in 2 : vector<2x8x16xf32>, vector<2x8x16xf32> -> vector<2x8x32xf32>
    %c0_6 = arith.constant 0 : index
    %c0_7 = arith.constant 0 : index
    %c0_8 = arith.constant 0 : index
    %20 = vector.load %arg6[%c0_6, %c0_7, %c0_8] : memref<2x8x32xf32, #tpu.memory_space<vmem>>, vector<2x8x32xf32>
    tpu.vector_store %arg6[%c0_6, %c0_7, %c0_8], %19 {strides = array<i32>} : memref<2x8x32xf32, #tpu.memory_space<vmem>>, vector<2x8x32xf32>,
    %c0_9 = arith.constant 0 : index
    %c0_10 = arith.constant 0 : index
    %c0_11 = arith.constant 0 : index
    %21 = vector.load %arg5[%c0_9, %c0_10, %c0_11] : memref<2x8x32xf32, #tpu.memory_space<vmem>>, vector<2x8x32xf32>
    %22 = vector.extract_strided_slice %21 {offsets = [0, 0, 0], sizes = [2, 8, 16], strides = [1, 1, 1]} : vector<2x8x32xf32> to vector<2x8x16xf32>
    %23 = vector.extract_strided_slice %21 {offsets = [0, 0, 16], sizes = [2, 8, 16], strides = [1, 1, 1]} : vector<2x8x32xf32> to vector<2x8x16xf32>
    %24 = vector.shape_cast %0 : vector<8x16xf32> to vector<1x8x16xf32>
    %25 = vector.broadcast %24 : vector<1x8x16xf32> to vector<2x8x16xf32>
    %26 = arith.mulf %22, %25 : vector<2x8x16xf32>
    %27 = vector.shape_cast %1 : vector<8x16xf32> to vector<1x8x16xf32>
    %28 = vector.broadcast %27 : vector<1x8x16xf32> to vector<2x8x16xf32>
    %29 = arith.mulf %23, %28 : vector<2x8x16xf32>
    %30 = arith.subf %26, %29 : vector<2x8x16xf32>
    %31 = vector.shape_cast %0 : vector<8x16xf32> to vector<1x8x16xf32>
    %32 = vector.broadcast %31 : vector<1x8x16xf32> to vector<2x8x16xf32>
    %33 = arith.mulf %23, %32 : vector<2x8x16xf32>
    %34 = vector.shape_cast %1 : vector<8x16xf32> to vector<1x8x16xf32>
    %35 = vector.broadcast %34 : vector<1x8x16xf32> to vector<2x8x16xf32>
    %36 = arith.mulf %22, %35 : vector<2x8x16xf32>
    %37 = arith.addf %33, %36 : vector<2x8x16xf32>
    %38 = tpu.concatenate %30, %37 in 2 : vector<2x8x16xf32>, vector<2x8x16xf32> -> vector<2x8x32xf32>
    %c0_12 = arith.constant 0 : index
    %c0_13 = arith.constant 0 : index
    %c0_14 = arith.constant 0 : index
    %39 = vector.load %arg7[%c0_12, %c0_13, %c0_14] : memref<2x8x32xf32, #tpu.memory_space<vmem>>, vector<2x8x32xf32>
    tpu.vector_store %arg7[%c0_12, %c0_13, %c0_14], %38 {strides = array<i32>} : memref<2x8x32xf32, #tpu.memory_space<vmem>>, vector<2x8x32xf32>,
    return
  }
  func.func @transform_0(%arg0: i32, %arg1: i32) -> (i32, i32) {
    %c0_i32 = arith.constant 0 : i32
    %c0_i32_0 = arith.constant 0 : i32
    return %arg0, %c0_i32 : i32, i32
  }
  func.func @transform_1(%arg0: i32, %arg1: i32) -> (i32, i32) {
    %c0_i32 = arith.constant 0 : i32
    %c0_i32_0 = arith.constant 0 : i32
    return %arg0, %c0_i32 : i32, i32
  }
  func.func @transform_2(%arg0: i32, %arg1: i32) -> (i32, i32, i32) {
    %c0_i32 = arith.constant 0 : i32
    %c0_i32_0 = arith.constant 0 : i32
    return %arg1, %arg0, %c0_i32 : i32, i32, i32
  }
  func.func @transform_3(%arg0: i32, %arg1: i32) -> (i32, i32, i32) {
    %c0_i32 = arith.constant 0 : i32
    %c0_i32_0 = arith.constant 0 : i32
    return %arg1, %arg0, %c0_i32 : i32, i32, i32
  }
  func.func @transform_4(%arg0: i32, %arg1: i32) -> (i32, i32, i32) {
    %c0_i32 = arith.constant 0 : i32
    %c0_i32_0 = arith.constant 0 : i32
    return %arg1, %arg0, %c0_i32 : i32, i32, i32
  }
  func.func @transform_5(%arg0: i32, %arg1: i32) -> (i32, i32, i32) {
    %c0_i32 = arith.constant 0 : i32
    %c0_i32_0 = arith.constant 0 : i32
    return %arg1, %arg0, %c0_i32 : i32, i32, i32
  }
}

</mosaic_0001>

<bundles_post_ra>
// kernel: tpu_custom_call.1
= control target key start
LH: loop header
LB: loop body
LE: loop exit
PB: predicated region body
PF: predicated region fallthrough
CT: control target
= control target key end

     0   :  { %11 = vsyncpa [#allocation3], 0  ;;  %s441_s0 = inlined_call_operand.hbm [shape: f32[8,16], index: 0, kind: input, shape index: {}]   ;;  %s442_s1 = inlined_call_operand.hbm [shape: f32[8,16], index: 1, kind: input, shape index: {}]   ;;  %s443_s2 = inlined_call_operand.hbm [shape: f32[2,8,32], index: 2, kind: input, shape index: {}]   ;;  %s444_s3 = inlined_call_operand.hbm [shape: f32[2,8,32], index: 3, kind: input, shape index: {}]   ;;  %s445_s4 = inlined_call_operand.hbm [shape: f32[2,8,32], index: 4, kind: output, shape index: {0}]   ;;  %s446_s5 = inlined_call_operand.hbm [shape: f32[2,8,32], index: 5, kind: output, shape index: {1}]  }
   0x1   :  { %12 = vsyncpa [#allocation6], 0 }
   0x2   :  { %13 = vsyncpa [#allocation9], 0 }
   0x3   :  { %14 = vsyncpa [#allocation4], 0  ;;  %s32_s20 = sshll.u32 %s442_s1, 4  ;;  %s33_s20 = int_to_ptr.hbm [resolvable:$true] %s32_s20 }
   0x4   :  { %15 = vsyncpa [#allocation12], 0  ;;  %s363_s21 = smov [#allocation5]   ;;  %s21_s25 = sshll.u32 %s441_s0, 4  ;;  %s22_s25 = int_to_ptr.hbm [resolvable:$true] %s21_s25 }
   0x5   :  { %s34_s22 = sshll.u32 %s363_s21, 4  ;;  %s364_s26 = smov [#allocation2]   ;;  %s35_s22 = int_to_ptr.vmem [resolvable:$true] %s34_s22 }
   0x6   :  { %37 = dma.hbm_to_vmem [thread:$0]  %s33_s20, 128, %s35_s22, [#allocation6]  }
   0x7   :  { %s23_s27 = sshll.u32 %s364_s26, 4  ;;  %s42_s30 = sshll.u32 %s443_s2, 4  ;;  %s24_s27 = int_to_ptr.vmem [resolvable:$true] %s23_s27  ;;  %s43_s30 = int_to_ptr.hbm [resolvable:$true] %s42_s30 }
   0x8   :  { %26 = dma.hbm_to_vmem [thread:$0]  %s22_s25, 128, %s24_s27, [#allocation3]  }
   0x9   :  { %s365_s1 = smov [#allocation7]   ;;  %s55_s9 = sshll.u32 %s444_s3, 4  ;;  %s56_s9 = int_to_ptr.hbm [resolvable:$true] %s55_s9 }
   0xa   :  { %s44_s6 = sshll.u32 %s365_s1, 4  ;;  %s366_s10 = smov 128   ;;  %s45_s6 = int_to_ptr.vmem [resolvable:$true] %s44_s6 }
   0xb   :  { %s367_s0 = smov 8   ;;  %s368_s11 = smov [#allocation8]  }
   0xc   :  { %50 = dma.hbm_to_vmem [thread:$0]  %s43_s30, 256, %s45_s6, [#allocation6], %s366_s10, %s366_s10, %s367_s0  }
   0xd   :  { %s57_s12 = sshll.u32 %s368_s11, 4  ;;  %s58_s12 = int_to_ptr.vmem [resolvable:$true] %s57_s12 }
   0xe   :  { %63 = dma.hbm_to_vmem [thread:$0]  %s56_s9, 256, %s58_s12, [#allocation9], %s366_s10, %s366_s10, %s367_s0  }
   0xf   :  { %353 = dma.done.wait [#allocation3], 128  }
  0x10   :  { %354 = vsyncadd [#allocation3], 4294967168 }
  0x11   :  { %355 = dma.done.wait [#allocation6], 384  }
  0x12   :  { %356 = vsyncadd [#allocation6], 4294966912 }
  0x13   :  { %357 = dma.done.wait [#allocation9], 256  }
  0x14   :  { %358 = vsyncadd [#allocation9], 4294967040  ;;  %v81_v0 = vld [vmem:[#allocation5] sm:$0xff]  ;;  %s369_s2 = smov 16   ;;  %v80_v1 = vld [vmem:[#allocation2] sm:$0xff]  ;;  %s370_s3 = smov 112  }
  0x15   :  { %87 = vrot.lane.b32.xlu0 %v81_v0, %s369_s2  ;;  %v82_v2 = vld [vmem:[#allocation7] sm:$0xff]  ;;  %v83_v4 = vld [vmem:[#allocation7 + $0x8] sm:$0xff]  ;;  %v126_v6 = vld [vmem:[#allocation8] sm:$0xff]  ;;  %vm120_vm0 = vcmask 130048   ;;  %vm123_vm1 = vcmask 261120   ;;  %s371_s13 = smov [#allocation10]  }
  0x16   :  { %v108_v3 = vmul.f32 %v82_v2, %v81_v0  ;;  %v109_v5 = vmul.f32 %v83_v4, %v81_v0  ;;  %v144_v7 = vmul.f32 %v126_v6, %v81_v0  ;;  %v127_v11 = vld [vmem:[#allocation8 + $0x8] sm:$0xff]  ;;  %v84_v21 = vmul.f32 %v82_v2, %v80_v1  ;;  %s164_s14 = sshll.u32 %s371_s13, 4  ;;  %s166_s17 = sshll.u32 %s445_s4, 4  ;;  %s165_s14 = int_to_ptr.vmem [resolvable:$true] %s164_s14  ;;  %s167_s17 = int_to_ptr.hbm [resolvable:$true] %s166_s17 }
  0x17   :  { %v145_v12 = vmul.f32 %v127_v11, %v81_v0  ;;  %v128_v22 = vmul.f32 %v126_v6, %v80_v1  ;;  %v85_v32 = vmul.f32 %v83_v4, %v80_v1  ;;  %v129_v37 = vmul.f32 %v127_v11, %v80_v1  ;;  %s372_s18 = smov [#allocation11]   ;;  %s179_s21 = sshll.u32 %s446_s5, 4  ;;  %s180_s21 = int_to_ptr.hbm [resolvable:$true] %s179_s21 }
  0x18   :  { %112 = vrot.lane.b32.xlu2 %v108_v3, %s369_s2  ;;  %s177_s19 = sshll.u32 %s372_s18, 4  ;;  %s178_s19 = int_to_ptr.vmem [resolvable:$true] %s177_s19 }
  0x1d   :  { %103 = vrot.lane.b32.xlu0 %v80_v1, %s369_s2 }
  0x20   :  { %114 = vrot.lane.b32.xlu2 %v109_v5, %s369_s2 }
  0x28   :  { %148 = vrot.lane.b32.xlu2 %v144_v7, %s369_s2 }
  0x72   :  { %v113_v15 = vpop.permute.xlu2 %112 }
  0x7a   :  { %v115_v16 = vpop.permute.xlu2 %114 }
  0x82   :  { %v149_v20 = vpop.permute.xlu2 %148 }
  0x87   :  { %v88_v8 = vpop.permute.xlu0 %87 }
  0x88   :  { %v90_v9 = vmul.f32 %v88_v8, %v82_v2  ;;  %v130_v10 = vmul.f32 %v126_v6, %v88_v8  ;;  %v91_v13 = vmul.f32 %v88_v8, %v83_v4  ;;  %v131_v14 = vmul.f32 %v127_v11, %v88_v8 }
  0x8a   :  { %94 = vrot.lane.b32.xlu1 %v90_v9, %s370_s3  ;;  %134 = vrot.lane.b32.xlu0 %v130_v10, %s370_s3 }
  0x8f   :  { %v104_v17 = vpop.permute.xlu0 %103 }
  0x90   :  { %v106_v18 = vmul.f32 %v104_v17, %v82_v2  ;;  %v142_v19 = vmul.f32 %v126_v6, %v104_v17  ;;  %v107_v31 = vmul.f32 %v104_v17, %v83_v4  ;;  %v143_v39 = vmul.f32 %v127_v11, %v104_v17 }
  0x92   :  { %96 = vrot.lane.b32.xlu1 %v91_v13, %s370_s3  ;;  %150 = vrot.lane.b32.xlu0 %v145_v12, %s369_s2  ;;  %v118_v23 = vadd.f32 %v113_v15, %v106_v18  ;;  %v154_v24 = vadd.f32 %v149_v20, %v142_v19  ;;  %v119_v34 = vadd.f32 %v115_v16, %v107_v31 }
  0x9a   :  { %136 = vrot.lane.b32.xlu1 %v131_v14, %s370_s3 }
  0xfc   :  { %v95_v25 = vpop.permute.xlu1 %94  ;;  %v135_v26 = vpop.permute.xlu0 %134 }
  0xfd   :  { %v100_v27 = vsub.f32 %v84_v21, %v95_v25  ;;  %v140_v28 = vsub.f32 %v128_v22, %v135_v26 }
  0xff   :  { %v121_v29 = vsel %vm120_vm0, %v100_v27, %v118_v23  ;;  %v156_v30 = vsel %vm120_vm0, %v140_v28, %v154_v24 }
 0x100   :  { %124 = vst.msk [vmem:[#allocation10] sm:$0xff] %vm123_vm1, %v121_v29 }
 0x101   :  { %158 = vst.msk [vmem:[#allocation11] sm:$0xff] %vm123_vm1, %v156_v30 }
 0x104   :  { %v97_v33 = vpop.permute.xlu1 %96  ;;  %v151_v38 = vpop.permute.xlu0 %150 }
 0x105   :  { %v101_v35 = vsub.f32 %v85_v32, %v97_v33  ;;  %v155_v41 = vadd.f32 %v151_v38, %v143_v39 }
 0x107   :  { %v122_v36 = vsel %vm120_vm0, %v101_v35, %v119_v34 }
 0x108   :  { %125 = vst.msk [vmem:[#allocation10 + $0x8] sm:$0xff] %vm123_vm1, %v122_v36 }
 0x109   :  { %172 = dma.vmem_to_hbm [thread:$0]  %s165_s14, 256, %s167_s17, [#allocation4], %s366_s10, %s366_s10, %s367_s0  }
 0x10c   :  { %v137_v40 = vpop.permute.xlu1 %136 }
 0x10d   :  { %v141_v42 = vsub.f32 %v129_v37, %v137_v40 }
 0x10f   :  { %v157_v43 = vsel %vm120_vm0, %v141_v42, %v155_v41 }
 0x110   :  { %159 = vst.msk [vmem:[#allocation11 + $0x8] sm:$0xff] %vm123_vm1, %v157_v43 }
 0x111   :  { %185 = dma.vmem_to_hbm [thread:$0]  %s178_s19, 256, %s180_s21, [#allocation12], %s366_s10, %s366_s10, %s367_s0  }
 0x112   :  { %359 = dma.done.wait [#allocation4], 256  }
 0x113   :  { %360 = vsyncadd [#allocation4], 4294967040 }
 0x114   :  { %361 = dma.done.wait [#allocation12], 256  }
 0x115   :  { %362 = vsyncadd [#allocation12], 4294967040 }
 0x116   :  { %194 = vsyncpa [#allocation3], 1 }
 0x117   :  { %195 = vsyncpa [#allocation6], 1 }
 0x118   :  { %196 = vsyncpa [#allocation9], 1 }
 0x119   :  { %197 = vsyncpa [#allocation4], 1 }
 0x11a   :  { %198 = vsyncpa [#allocation12], 1 }

</bundles_post_ra>
